<compile_context>
chip_gen: v6e
topology: v6e:2x2x1
jax: 0.10.0
libtpu: 0.0.40
codegen_flags: <defaults>
</compile_context>

<pallas_src>
import functools
from dataclasses import dataclass

import jax
import jax.numpy as jnp
from jax.experimental import pallas as pl
from jax.experimental.pallas import tpu as pltpu


# ----------------------------------------------------------------------------
# Small helpers
# ----------------------------------------------------------------------------

def _cdiv(a, b):
    return (a + b - 1) // b


def _round_up(x, m):
    return ((x + m - 1) // m) * m


def _sublane_tile(dtype):
    # 8 sublanes for 4-byte dtypes, 16 for 2-byte, 32 for 1-byte.
    return max(8, 32 // jnp.dtype(dtype).itemsize)


def _vmem_budget():
    """Return (vmem_limit_bytes, streaming_budget_bytes) adapted to the chip.

    v5e/v6e have 128 MiB VMEM (use big tiles); v7x only 64 MiB per core, so
    the fallback stays conservative.
    """
    try:
        cap = int(pltpu.get_tpu_info().vmem_capacity_bytes)
    except Exception:
        cap = 64 * 1024 * 1024
    limit = max(32 * 1024 * 1024, min(int(cap * 0.70), 100 * 1024 * 1024))
    stream = limit - 4 * 1024 * 1024          # headroom for scratch/compiler temps
    return limit, stream


def _choose_tiling(n, granule, bytes_per_unit, budget_bytes):
    """Split a length-n axis into tiles so 2 operands x 2 buffers fit `budget`.

    bytes_per_unit must already include lane/sublane padding of the *other*
    (non-tiled) axis.  Returns (tile, n_tiles, padded_n).  When everything
    fits in one block, the block covers the full (unpadded) extent.
    """
    per_unit = 4 * bytes_per_unit             # 2 operands x 2 pipeline buffers
    cap = budget_bytes // per_unit
    cap = max(granule, (cap // granule) * granule)
    if n <= cap:
        return n, 1, n                        # single full-extent block, no pad
    n_tiles = _cdiv(n, cap)
    tile = _round_up(_cdiv(n, n_tiles), granule)   # balanced tile -> minimal pad
    n_tiles = _cdiv(n, tile)
    return tile, n_tiles, tile * n_tiles


# ----------------------------------------------------------------------------
# Fused Pallas kernel: soft (logit) distillation loss + PKD (patient) loss
# ----------------------------------------------------------------------------

def _softmax(x, axis):
    m = jnp.max(x, axis=axis, keepdims=True)
    e = jnp.exp(x - m)
    # approx reciprocal lands on the (otherwise idle) EUP slot.
    return e * pl.reciprocal(jnp.sum(e, axis=axis, keepdims=True), approx=True)


def _accumulate(acc_ref, dd):
    """Cheap per-step accumulation of a tile's squared-difference contribution.

    (8, lanes) accumulator: fold sublane groups with pure vreg adds (VPU only).
    (1, lanes) accumulator: a single cross-sublane reduce.
    Full collapse to a scalar happens once, in the finalize step.
    """
    if acc_ref.shape[0] == 8:
        r, h = dd.shape
        acc_ref[...] += jnp.sum(dd.reshape(r // 8, 8, h), axis=0)
    else:
        acc_ref[...] += jnp.sum(dd, axis=0, keepdims=True)


def _fused_loss_kernel(tl_ref, sl_ref, tf_ref, sf_ref,
                       soft_out_ref, pkd_out_ref,
                       soft_acc, pkd_acc, *,
                       soft_transposed, inv_temp, t_sq, logits_mse,
                       compute_pkd, nt_soft, nt_pkd, ns_soft, ns_pkd,
                       soft_count, pkd_count):
    c = pl.program_id(0)          # TensorCore split ("parallel")
    i = pl.program_id(1)          # streaming step within the core's slice
    last = pl.num_programs(1) - 1

    @pl.when(i == 0)
    def _init():
        soft_acc[...] = jnp.zeros_like(soft_acc)
        pkd_acc[...] = jnp.zeros_like(pkd_acc)

    # ---- soft (logit) loss partial -----------------------------------------
    soft_tile = c * ns_soft + i

    @pl.when(jnp.logical_and(i < ns_soft, soft_tile < nt_soft))
    def _soft():
        t = tl_ref[...].astype(jnp.float32)
        s = sl_ref[...].astype(jnp.float32)
        if not logits_mse:
            # temperature folded at trace time: multiply by 1/T (no divides)
            t = t * inv_temp
            s = s * inv_temp
        ax = 0 if soft_transposed else 1      # class axis (sublanes if transposed)
        d = _softmax(t, ax) - _softmax(s, ax)
        _accumulate(soft_acc, d * d)

    # ---- PKD (patient) loss partial: per-row L2-normalize then sum-sq ------
    if compute_pkd:
        pkd_tile = c * ns_pkd + i

        @pl.when(jnp.logical_and(i < ns_pkd, pkd_tile < nt_pkd))
        def _pkd():
            t = tf_ref[...].astype(jnp.float32)
            s = sf_ref[...].astype(jnp.float32)
            # rsqrt (EUP) + multiply instead of sqrt + divide; eps guards
            # all-zero rows (padding) so they contribute exactly 0.
            # TODO(synk): on v7x a cosine-form rewrite (2 - 2<s,t>/(|s||t|))
            # saves ~half the VPU ops but needs explicit padded-row masking.
            t_n = t * jax.lax.rsqrt(jnp.sum(t * t, axis=-1, keepdims=True) + 1e-12)
            s_n = s * jax.lax.rsqrt(jnp.sum(s * s, axis=-1, keepdims=True) + 1e-12)
            d = s_n - t_n
            _accumulate(pkd_acc, d * d)

    # ---- finalize: collapse accumulators to scalars once, per core ---------
    @pl.when(i == last)
    def _finalize():
        soft_scale = (1.0 if logits_mse else t_sq) / float(soft_count)
        soft_val = jnp.sum(soft_acc[...]) * soft_scale
        soft_out_ref[...] = jnp.broadcast_to(soft_val, soft_out_ref.shape)
        if compute_pkd:
            pkd_val = jnp.sum(pkd_acc[...]) * (1.0 / float(pkd_count))
            pkd_out_ref[...] = jnp.broadcast_to(pkd_val, pkd_out_ref.shape)
        else:
            pkd_out_ref[...] = jnp.zeros_like(pkd_out_ref)


def fused_distill_losses(t_logits, s_logits, t_feat, s_feat, *,
                         temperature, logits_mse, compute_pkd):
    """Single pallas_call computing (soft_loss, pkd_loss) as two f32 scalars.

    t_logits/s_logits: [B, C];  t_feat/s_feat: [R, H] (rows = layers*batch).
    Zero-padded rows/cols contribute exactly 0 to both sums (padded logit
    columns see identical uniform softmaxes), so no masking is needed.
    """
    B, C = t_logits.shape
    soft_count = B * C

    vmem_limit, stream_budget = _vmem_budget()
    soft_budget = stream_budget // 4          # logits path is the small one

    # ---- soft (logit) path layout & tiling ----------------------------------
    dt_l = t_logits.dtype
    it_l = jnp.dtype(dt_l).itemsize
    sub_l = _sublane_tile(dt_l)
    soft_transposed = C < 128                 # lane-dense layout for small class counts

    if soft_transposed:
        tl, sl = t_logits.T, s_logits.T       # [C, B]: classes on sublanes
        unit = _round_up(C, sub_l) * it_l     # bytes per lane column of a block
        tile_soft, nt_soft, padded_b = _choose_tiling(B, 128, unit, soft_budget)
        if padded_b != B:
            pad = padded_b - B
            tl = jnp.pad(tl, ((0, 0), (0, pad)))
            sl = jnp.pad(sl, ((0, 0), (0, pad)))
        soft_block = (C, tile_soft)
        soft_block_bytes = _round_up(C, sub_l) * _round_up(tile_soft, 128) * it_l
        soft_acc_shape = (1, tile_soft)
    else:
        tl, sl = t_logits, s_logits           # [B, C]: classes on lanes
        unit = _round_up(C, 128) * it_l       # bytes per row of a block
        tile_soft, nt_soft, padded_b = _choose_tiling(B, sub_l, unit, soft_budget)
        if padded_b != B:
            pad = padded_b - B
            tl = jnp.pad(tl, ((0, pad), (0, 0)))
            sl = jnp.pad(sl, ((0, pad), (0, 0)))
        soft_block = (tile_soft, C)
        soft_block_bytes = _round_up(tile_soft, sub_l) * _round_up(C, 128) * it_l
        soft_acc_shape = (8, C) if tile_soft % 8 == 0 else (1, C)

    # ---- PKD (feature) path tiling: gets the remaining VMEM budget ----------
    if compute_pkd:
        R, H = s_feat.shape
        pkd_count = R * H
        tf, sf = t_feat, s_feat
    else:
        # Minimal dummies so the fused kernel keeps a uniform signature.
        tf = jnp.zeros((8, 128), jnp.float32)
        sf = jnp.zeros((8, 128), jnp.float32)
        R, H = 8, 128
        pkd_count = 1

    dt_f = sf.dtype
    it_f = jnp.dtype(dt_f).itemsize
    sub_f = _sublane_tile(dt_f)
    pkd_budget = max(stream_budget - 4 * soft_block_bytes, 4 * 1024 * 1024)
    unit_f = _round_up(H, 128) * it_f
    tile_pkd, nt_pkd, padded_r = _choose_tiling(R, sub_f, unit_f, pkd_budget)
    if padded_r != R:
        pad = padded_r - R
        tf = jnp.pad(tf, ((0, pad), (0, 0)))
        sf = jnp.pad(sf, ((0, pad), (0, 0)))
    pkd_block = (tile_pkd, H)
    pkd_acc_shape = (8, H) if tile_pkd % 8 == 0 else (1, H)

    # ---- grid: ("parallel" core split) x ("arbitrary" streaming reduction) --
    NC = 2                                    # shards across TCs on v7x/megacore;
    ns_soft = _cdiv(nt_soft, NC)              # plain sequential loop on 1-TC chips
    ns_pkd = _cdiv(nt_pkd, NC)
    n_steps = max(ns_soft, ns_pkd)
    grid = (NC, n_steps)

    # Clamp the block index once a path runs out of tiles: no extra DMAs are
    # issued (block index stops changing) and the pl.when guard skips compute.
    if soft_transposed:
        soft_imap = lambda c, i: (0, jnp.minimum(c * ns_soft + i, nt_soft - 1))
    else:
        soft_imap = lambda c, i: (jnp.minimum(c * ns_soft + i, nt_soft - 1), 0)
    pkd_imap = lambda c, i: (jnp.minimum(c * ns_pkd + i, nt_pkd - 1), 0)
    out_imap = lambda c, i: (c, 0, 0)

    kern = functools.partial(
        _fused_loss_kernel,
        soft_transposed=soft_transposed,
        inv_temp=1.0 / float(temperature),
        t_sq=float(temperature) ** 2,
        logits_mse=bool(logits_mse),
        compute_pkd=bool(compute_pkd),
        nt_soft=nt_soft, nt_pkd=nt_pkd,
        ns_soft=ns_soft, ns_pkd=ns_pkd,
        soft_count=soft_count, pkd_count=pkd_count,
    )

    soft_parts, pkd_parts = pl.pallas_call(
        kern,
        grid=grid,
        in_specs=[
            pl.BlockSpec(soft_block, soft_imap),
            pl.BlockSpec(soft_block, soft_imap),
            pl.BlockSpec(pkd_block, pkd_imap),
            pl.BlockSpec(pkd_block, pkd_imap),
        ],
        out_specs=(
            pl.BlockSpec((1, 8, 128), out_imap),
            pl.BlockSpec((1, 8, 128), out_imap),
        ),
        out_shape=(
            jax.ShapeDtypeStruct((NC, 8, 128), jnp.float32),
            jax.ShapeDtypeStruct((NC, 8, 128), jnp.float32),
        ),
        scratch_shapes=[
            pltpu.VMEM(soft_acc_shape, jnp.float32),   # soft-loss partial sums
            pltpu.VMEM(pkd_acc_shape, jnp.float32),    # pkd-loss partial sums
        ],
        compiler_params=pltpu.CompilerParams(
            dimension_semantics=("parallel", "arbitrary"),
            vmem_limit_bytes=vmem_limit,
        ),
    )(tl, sl, tf, sf)

    soft_loss = jnp.sum(soft_parts[:, 0, 0])
    pkd_loss = jnp.sum(pkd_parts[:, 0, 0])
    return soft_loss, pkd_loss


# ----------------------------------------------------------------------------
# Synthetic teacher / student "BERT-like" models (plain-JAX glue; the original
# module receives these as external nn.Modules)
# ----------------------------------------------------------------------------

@dataclass
class Config:
    num_hidden_layers: int
    hidden_size: int


@dataclass
class Args:
    temperature: float = 2.0
    logits_mse: bool = False
    beta: float = 1.0
    max_seq_length: int = 8


def make_tiny_model_params(key, vocab, n_types, hidden, num_layers, num_labels):
    keys = jax.random.split(key, 4 + num_layers)
    params = {
        "emb": jax.random.normal(keys[0], (vocab, hidden), jnp.float32) * 0.1,
        "type_emb": jax.random.normal(keys[1], (n_types, hidden), jnp.float32) * 0.1,
        "w": [jax.random.normal(keys[4 + l], (hidden, hidden), jnp.float32) * 0.1
              for l in range(num_layers)],
        "b": [jnp.zeros((hidden,), jnp.float32) for _ in range(num_layers)],
        "w_cls": jax.random.normal(keys[2], (hidden, num_labels), jnp.float32) * 0.1,
        "b_cls": jnp.zeros((num_labels,), jnp.float32),
    }
    return params


def tiny_model(params, input_ids, token_type_ids, attention_mask, labels, num_layers):
    # Returns (loss, logits, hidden_states) mimicking a HF-style model output.
    emb = params["emb"][input_ids] + params["type_emb"][token_type_ids]       # [B,S,H]
    mask = attention_mask[..., None].astype(jnp.float32)
    hidden_states = [emb]
    h = emb
    for l in range(num_layers):
        h = jnp.tanh(h @ params["w"][l] + params["b"][l]) * mask
        hidden_states.append(h)
    cls = h[:, 0, :]
    logits = cls @ params["w_cls"] + params["b_cls"]                           # [B,C]
    log_probs = jax.nn.log_softmax(logits, axis=-1)
    loss = -jnp.mean(jnp.take_along_axis(log_probs, labels[:, None], axis=-1))
    return loss, logits, tuple(hidden_states)


# ----------------------------------------------------------------------------
# MetaPatientDistillation.forward equivalent
# ----------------------------------------------------------------------------

def meta_patient_distillation_forward(
    t_params, s_params, order, input_ids, token_type_ids, attention_mask,
    labels, args, teacher_grad, t_config, s_config,
):
    t_loss, t_logits, t_features = tiny_model(
        t_params, input_ids, token_type_ids, attention_mask, labels,
        t_config.num_hidden_layers)
    if teacher_grad:
        train_loss_t = t_loss
    else:
        t_logits = jax.lax.stop_gradient(t_logits)
        t_features = tuple(jax.lax.stop_gradient(f) for f in t_features)
        train_loss_t = 0.0

    s_loss, s_logits, s_features = tiny_model(
        s_params, input_ids, token_type_ids, attention_mask, labels,
        s_config.num_hidden_layers)

    train_loss = s_loss + train_loss_t

    compute_pkd = (args.beta != 0)
    if compute_pkd:
        # index-then-stack: only the `order`-selected teacher layers are
        # materialized (no full [L_t-1, B, H] stack + gather through HBM).
        # TODO(synk): feeding the per-layer [B,S,H] hidden states straight into
        # the pallas_call with `order` as a scalar-prefetch index_map would
        # also remove this [L,B,H] write+re-read; not worth it at these sizes.
        inter_t = t_features[1:-1]
        inter_s = s_features[1:-1]
        t_feat = jnp.stack([inter_t[i][:, 0, :] for i in order], axis=0)   # [L,B,H]
        s_feat = jnp.stack([f[:, 0, :] for f in inter_s], axis=0)          # [L,B,H]
        L, B, H = s_feat.shape
        t_feat = t_feat.reshape(L * B, H)
        s_feat = s_feat.reshape(L * B, H)
    else:
        t_feat = None
        s_feat = None

    soft_loss, pkd_loss = fused_distill_losses(
        t_logits, s_logits, t_feat, s_feat,
        temperature=args.temperature,
        logits_mse=args.logits_mse,
        compute_pkd=compute_pkd)

    return train_loss, soft_loss, pkd_loss


# ----------------------------------------------------------------------------
# Example run
# ----------------------------------------------------------------------------

if __name__ == "__main__":
    key = jax.random.PRNGKey(0)
    k_ids, k_types, k_lab, k_t, k_s = jax.random.split(key, 5)

    B, S = 8, 8
    vocab, n_types, num_labels = 32, 2, 4
    hidden = 32
    t_config = Config(num_hidden_layers=6, hidden_size=hidden)
    s_config = Config(num_hidden_layers=4, hidden_size=hidden)
    args = Args(temperature=2.0, logits_mse=False, beta=1.0, max_seq_length=S)
    order = [0, 2, 4]  # selects (s_layers - 1) = 3 teacher intermediate layers

    input_ids = jax.random.randint(k_ids, (B, S), 0, vocab, dtype=jnp.int32)
    token_type_ids = jax.random.randint(k_types, (B, S), 0, n_types, dtype=jnp.int32)
    attention_mask = jnp.ones((B, S), jnp.int32)
    labels = jax.random.randint(k_lab, (B,), 0, num_labels, dtype=jnp.int32)

    t_params = make_tiny_model_params(k_t, vocab, n_types, hidden,
                                      t_config.num_hidden_layers, num_labels)
    s_params = make_tiny_model_params(k_s, vocab, n_types, hidden,
                                      s_config.num_hidden_layers, num_labels)

    train_loss, soft_loss, pkd_loss = meta_patient_distillation_forward(
        t_params, s_params, order, input_ids, token_type_ids, attention_mask,
        labels, args, teacher_grad=False, t_config=t_config, s_config=s_config)

    jax.block_until_ready((train_loss, soft_loss, pkd_loss))
    print("KERNEL_OK")
</pallas_src>

<mosaic_0001>
module attributes {stable_mosaic.version = 11 : i64} {
  func.func @_fused_loss_kernel(%arg0: i32, %arg1: i32, %arg2: memref<4x8xf32, #tpu.memory_space<vmem>>, %arg3: memref<4x8xf32, #tpu.memory_space<vmem>>, %arg4: memref<24x32xf32, #tpu.memory_space<vmem>>, %arg5: memref<24x32xf32, #tpu.memory_space<vmem>>, %arg6: memref<1x8x128xf32, #tpu.memory_space<vmem>>, %arg7: memref<1x8x128xf32, #tpu.memory_space<vmem>>, %arg8: memref<1x8xf32, #tpu.memory_space<vmem>>, %arg9: memref<8x32xf32, #tpu.memory_space<vmem>>) attributes {dimension_semantics = [#tpu.dimension_semantics<parallel>, #tpu.dimension_semantics<arbitrary>], iteration_bounds = array<i64: 2, 1>, scalar_prefetch = 0 : i64, scratch_operands = 2 : i64, tpu.core_type = #tpu.core_type<tc>, window_params = [{transform_indices = @transform_0, window_bounds = array<i64: 4, 8>}, {transform_indices = @transform_1, window_bounds = array<i64: 4, 8>}, {transform_indices = @transform_2, window_bounds = array<i64: 24, 32>}, {transform_indices = @transform_3, window_bounds = array<i64: 24, 32>}, {transform_indices = @transform_4, window_bounds = array<i64: 1, 8, 128>}, {transform_indices = @transform_5, window_bounds = array<i64: 1, 8, 128>}]} {
    %c0_i32 = arith.constant 0 : i32
    %0 = arith.cmpi eq, %arg1, %c0_i32 : i32
    %1 = arith.extui %0 : i1 to i32
    %c0_i32_0 = arith.constant 0 : i32
    %2 = arith.cmpi ne, %1, %c0_i32_0 : i32
    scf.if %2 {
      %cst = arith.constant 0.000000e+00 : f32
      %20 = vector.broadcast %cst : f32 to vector<1x8xf32>
      %c0 = arith.constant 0 : index
      %c0_10 = arith.constant 0 : index
      %21 = vector.load %arg8[%c0, %c0_10] : memref<1x8xf32, #tpu.memory_space<vmem>>, vector<1x8xf32>
      tpu.vector_store %arg8[%c0, %c0_10], %20 {strides = array<i32>} : memref<1x8xf32, #tpu.memory_space<vmem>>, vector<1x8xf32>,
      %cst_11 = arith.constant 0.000000e+00 : f32
      %22 = vector.broadcast %cst_11 : f32 to vector<8x32xf32>
      %c0_12 = arith.constant 0 : index
      %c0_13 = arith.constant 0 : index
      %23 = vector.load %arg9[%c0_12, %c0_13] : memref<8x32xf32, #tpu.memory_space<vmem>>, vector<8x32xf32>
      tpu.vector_store %arg9[%c0_12, %c0_13], %22 {strides = array<i32>} : memref<8x32xf32, #tpu.memory_space<vmem>>, vector<8x32xf32>,
    } else {
    }
    %c1_i32 = arith.constant 1 : i32
    %3 = arith.muli %arg0, %c1_i32 : i32
    %4 = arith.addi %3, %arg1 : i32
    %c1_i32_1 = arith.constant 1 : i32
    %5 = arith.cmpi slt, %arg1, %c1_i32_1 : i32
    %c1_i32_2 = arith.constant 1 : i32
    %6 = arith.cmpi slt, %4, %c1_i32_2 : i32
    %7 = arith.andi %5, %6 : i1
    %8 = arith.extui %7 : i1 to i32
    %c0_i32_3 = arith.constant 0 : i32
    %9 = arith.cmpi ne, %8, %c0_i32_3 : i32
    scf.if %9 {
      %c0 = arith.constant 0 : index
      %c0_10 = arith.constant 0 : index
      %20 = vector.load %arg2[%c0, %c0_10] : memref<4x8xf32, #tpu.memory_space<vmem>>, vector<4x8xf32>
      %c0_11 = arith.constant 0 : index
      %c0_12 = arith.constant 0 : index
      %21 = vector.load %arg3[%c0_11, %c0_12] : memref<4x8xf32, #tpu.memory_space<vmem>>, vector<4x8xf32>
      %cst = arith.constant 5.000000e-01 : f32
      %22 = vector.broadcast %cst : f32 to vector<4x8xf32>
      %23 = arith.mulf %20, %22 : vector<4x8xf32>
      %cst_13 = arith.constant 5.000000e-01 : f32
      %24 = vector.broadcast %cst_13 : f32 to vector<4x8xf32>
      %25 = arith.mulf %21, %24 : vector<4x8xf32>
      %cst_14 = arith.constant dense<0xFF800000> : vector<8xf32>
      %26 = vector.multi_reduction <maximumf>, %23, %cst_14 [0] : vector<4x8xf32> to vector<8xf32>
      %27 = vector.shape_cast %26 : vector<8xf32> to vector<1x8xf32>
      %28 = vector.broadcast %27 : vector<1x8xf32> to vector<4x8xf32>
      %29 = arith.subf %23, %28 : vector<4x8xf32>
      %30 = math.exp %29 : vector<4x8xf32>
      %cst_15 = arith.constant dense<0.000000e+00> : vector<8xf32>
      %31 = vector.multi_reduction <add>, %30, %cst_15 [0] : vector<4x8xf32> to vector<8xf32>
      %32 = vector.shape_cast %31 : vector<8xf32> to vector<1x8xf32>
      %33 = tpu.reciprocal %32 {approx = true} : vector<1x8xf32> -> vector<1x8xf32>
      %34 = vector.broadcast %33 : vector<1x8xf32> to vector<4x8xf32>
      %35 = arith.mulf %30, %34 : vector<4x8xf32>
      %cst_16 = arith.constant dense<0xFF800000> : vector<8xf32>
      %36 = vector.multi_reduction <maximumf>, %25, %cst_16 [0] : vector<4x8xf32> to vector<8xf32>
      %37 = vector.shape_cast %36 : vector<8xf32> to vector<1x8xf32>
      %38 = vector.broadcast %37 : vector<1x8xf32> to vector<4x8xf32>
      %39 = arith.subf %25, %38 : vector<4x8xf32>
      %40 = math.exp %39 : vector<4x8xf32>
      %cst_17 = arith.constant dense<0.000000e+00> : vector<8xf32>
      %41 = vector.multi_reduction <add>, %40, %cst_17 [0] : vector<4x8xf32> to vector<8xf32>
      %42 = vector.shape_cast %41 : vector<8xf32> to vector<1x8xf32>
      %43 = tpu.reciprocal %42 {approx = true} : vector<1x8xf32> -> vector<1x8xf32>
      %44 = vector.broadcast %43 : vector<1x8xf32> to vector<4x8xf32>
      %45 = arith.mulf %40, %44 : vector<4x8xf32>
      %46 = arith.subf %35, %45 : vector<4x8xf32>
      %47 = arith.mulf %46, %46 : vector<4x8xf32>
      %c0_18 = arith.constant 0 : index
      %c0_19 = arith.constant 0 : index
      %48 = vector.load %arg8[%c0_18, %c0_19] : memref<1x8xf32, #tpu.memory_space<vmem>>, vector<1x8xf32>
      %cst_20 = arith.constant dense<0.000000e+00> : vector<8xf32>
      %49 = vector.multi_reduction <add>, %47, %cst_20 [0] : vector<4x8xf32> to vector<8xf32>
      %50 = vector.shape_cast %49 : vector<8xf32> to vector<1x8xf32>
      %51 = arith.addf %48, %50 : vector<1x8xf32>
      %c0_21 = arith.constant 0 : index
      %c0_22 = arith.constant 0 : index
      %52 = vector.load %arg8[%c0_21, %c0_22] : memref<1x8xf32, #tpu.memory_space<vmem>>, vector<1x8xf32>
      tpu.vector_store %arg8[%c0_21, %c0_22], %51 {strides = array<i32>} : memref<1x8xf32, #tpu.memory_space<vmem>>, vector<1x8xf32>,
    } else {
    }
    %c1_i32_4 = arith.constant 1 : i32
    %10 = arith.muli %arg0, %c1_i32_4 : i32
    %11 = arith.addi %10, %arg1 : i32
    %c1_i32_5 = arith.constant 1 : i32
    %12 = arith.cmpi slt, %arg1, %c1_i32_5 : i32
    %c1_i32_6 = arith.constant 1 : i32
    %13 = arith.cmpi slt, %11, %c1_i32_6 : i32
    %14 = arith.andi %12, %13 : i1
    %15 = arith.extui %14 : i1 to i32
    %c0_i32_7 = arith.constant 0 : i32
    %16 = arith.cmpi ne, %15, %c0_i32_7 : i32
    scf.if %16 {
      %c0 = arith.constant 0 : index
      %c0_10 = arith.constant 0 : index
      %20 = vector.load %arg4[%c0, %c0_10] : memref<24x32xf32, #tpu.memory_space<vmem>>, vector<24x32xf32>
      %c0_11 = arith.constant 0 : index
      %c0_12 = arith.constant 0 : index
      %21 = vector.load %arg5[%c0_11, %c0_12] : memref<24x32xf32, #tpu.memory_space<vmem>>, vector<24x32xf32>
      %22 = arith.mulf %20, %20 : vector<24x32xf32>
      %cst = arith.constant dense<0.000000e+00> : vector<24xf32>
      %23 = vector.multi_reduction <add>, %22, %cst [1] : vector<24x32xf32> to vector<24xf32>
      %24 = vector.shape_cast %23 : vector<24xf32> to vector<24x1xf32>
      %cst_13 = arith.constant 9.99999996E-13 : f32
      %25 = vector.broadcast %cst_13 : f32 to vector<24x1xf32>
      %26 = arith.addf %24, %25 : vector<24x1xf32>
      %27 = math.rsqrt %26 : vector<24x1xf32>
      %28 = vector.broadcast %27 : vector<24x1xf32> to vector<24x32xf32>
      %29 = arith.mulf %20, %28 : vector<24x32xf32>
      %30 = arith.mulf %21, %21 : vector<24x32xf32>
      %cst_14 = arith.constant dense<0.000000e+00> : vector<24xf32>
      %31 = vector.multi_reduction <add>, %30, %cst_14 [1] : vector<24x32xf32> to vector<24xf32>
      %32 = vector.shape_cast %31 : vector<24xf32> to vector<24x1xf32>
      %cst_15 = arith.constant 9.99999996E-13 : f32
      %33 = vector.broadcast %cst_15 : f32 to vector<24x1xf32>
      %34 = arith.addf %32, %33 : vector<24x1xf32>
      %35 = math.rsqrt %34 : vector<24x1xf32>
      %36 = vector.broadcast %35 : vector<24x1xf32> to vector<24x32xf32>
      %37 = arith.mulf %21, %36 : vector<24x32xf32>
      %38 = arith.subf %37, %29 : vector<24x32xf32>
      %39 = arith.mulf %38, %38 : vector<24x32xf32>
      %c0_16 = arith.constant 0 : index
      %c0_17 = arith.constant 0 : index
      %40 = vector.load %arg9[%c0_16, %c0_17] : memref<8x32xf32, #tpu.memory_space<vmem>>, vector<8x32xf32>
      %41 = vector.shape_cast %39 : vector<24x32xf32> to vector<3x8x32xf32>
      %cst_18 = arith.constant dense<0.000000e+00> : vector<8x32xf32>
      %42 = vector.multi_reduction <add>, %41, %cst_18 [0] : vector<3x8x32xf32> to vector<8x32xf32>
      %43 = arith.addf %40, %42 : vector<8x32xf32>
      %c0_19 = arith.constant 0 : index
      %c0_20 = arith.constant 0 : index
      %44 = vector.load %arg9[%c0_19, %c0_20] : memref<8x32xf32, #tpu.memory_space<vmem>>, vector<8x32xf32>
      tpu.vector_store %arg9[%c0_19, %c0_20], %43 {strides = array<i32>} : memref<8x32xf32, #tpu.memory_space<vmem>>, vector<8x32xf32>,
    } else {
    }
    %c0_i32_8 = arith.constant 0 : i32
    %17 = arith.cmpi eq, %arg1, %c0_i32_8 : i32
    %18 = arith.extui %17 : i1 to i32
    %c0_i32_9 = arith.constant 0 : i32
    %19 = arith.cmpi ne, %18, %c0_i32_9 : i32
    scf.if %19 {
      %c0 = arith.constant 0 : index
      %c0_10 = arith.constant 0 : index
      %20 = vector.load %arg8[%c0, %c0_10] : memref<1x8xf32, #tpu.memory_space<vmem>>, vector<1x8xf32>
      %21 = vector.shape_cast %20 : vector<1x8xf32> to vector<1x1x8xf32>
      %cst = arith.constant dense<0.000000e+00> : vector<1xf32>
      %22 = vector.multi_reduction <add>, %21, %cst [1, 2] : vector<1x1x8xf32> to vector<1xf32>
      %23 = vector.shape_cast %22 : vector<1xf32> to vector<1x1x1xf32>
      %24 = vector.extract %23[0, 0, 0] : f32 from vector<1x1x1xf32>
      %cst_11 = arith.constant 1.250000e-01 : f32
      %25 = arith.mulf %24, %cst_11 : f32
      %26 = vector.broadcast %25 : f32 to vector<1x8x128xf32>
      %c0_12 = arith.constant 0 : index
      %c0_13 = arith.constant 0 : index
      %c0_14 = arith.constant 0 : index
      %27 = vector.load %arg6[%c0_12, %c0_13, %c0_14] : memref<1x8x128xf32, #tpu.memory_space<vmem>>, vector<1x8x128xf32>
      tpu.vector_store %arg6[%c0_12, %c0_13, %c0_14], %26 {strides = array<i32>} : memref<1x8x128xf32, #tpu.memory_space<vmem>>, vector<1x8x128xf32>,
      %c0_15 = arith.constant 0 : index
      %c0_16 = arith.constant 0 : index
      %28 = vector.load %arg9[%c0_15, %c0_16] : memref<8x32xf32, #tpu.memory_space<vmem>>, vector<8x32xf32>
      %29 = vector.shape_cast %28 : vector<8x32xf32> to vector<1x8x32xf32>
      %cst_17 = arith.constant dense<0.000000e+00> : vector<1xf32>
      %30 = vector.multi_reduction <add>, %29, %cst_17 [1, 2] : vector<1x8x32xf32> to vector<1xf32>
      %31 = vector.shape_cast %30 : vector<1xf32> to vector<1x1x1xf32>
      %32 = vector.extract %31[0, 0, 0] : f32 from vector<1x1x1xf32>
      %cst_18 = arith.constant 0.00130208337 : f32
      %33 = arith.mulf %32, %cst_18 : f32
      %34 = vector.broadcast %33 : f32 to vector<1x8x128xf32>
      %c0_19 = arith.constant 0 : index
      %c0_20 = arith.constant 0 : index
      %c0_21 = arith.constant 0 : index
      %35 = vector.load %arg7[%c0_19, %c0_20, %c0_21] : memref<1x8x128xf32, #tpu.memory_space<vmem>>, vector<1x8x128xf32>
      tpu.vector_store %arg7[%c0_19, %c0_20, %c0_21], %34 {strides = array<i32>} : memref<1x8x128xf32, #tpu.memory_space<vmem>>, vector<1x8x128xf32>,
    } else {
    }
    return
  }
  func.func @transform_0(%arg0: i32, %arg1: i32) -> (i32, i32) {
    %c1_i32 = arith.constant 1 : i32
    %0 = arith.muli %arg0, %c1_i32 : i32
    %1 = arith.addi %0, %arg1 : i32
    %c0_i32 = arith.constant 0 : i32
    %2 = arith.minsi %1, %c0_i32 : i32
    %c0_i32_0 = arith.constant 0 : i32
    %c0_i32_1 = arith.constant 0 : i32
    return %c0_i32_0, %2 : i32, i32
  }
  func.func @transform_1(%arg0: i32, %arg1: i32) -> (i32, i32) {
    %c1_i32 = arith.constant 1 : i32
    %0 = arith.muli %arg0, %c1_i32 : i32
    %1 = arith.addi %0, %arg1 : i32
    %c0_i32 = arith.constant 0 : i32
    %2 = arith.minsi %1, %c0_i32 : i32
    %c0_i32_0 = arith.constant 0 : i32
    %c0_i32_1 = arith.constant 0 : i32
    return %c0_i32_0, %2 : i32, i32
  }
  func.func @transform_2(%arg0: i32, %arg1: i32) -> (i32, i32) {
    %c1_i32 = arith.constant 1 : i32
    %0 = arith.muli %arg0, %c1_i32 : i32
    %1 = arith.addi %0, %arg1 : i32
    %c0_i32 = arith.constant 0 : i32
    %2 = arith.minsi %1, %c0_i32 : i32
    %c0_i32_0 = arith.constant 0 : i32
    %c0_i32_1 = arith.constant 0 : i32
    return %2, %c0_i32_0 : i32, i32
  }
  func.func @transform_3(%arg0: i32, %arg1: i32) -> (i32, i32) {
    %c1_i32 = arith.constant 1 : i32
    %0 = arith.muli %arg0, %c1_i32 : i32
    %1 = arith.addi %0, %arg1 : i32
    %c0_i32 = arith.constant 0 : i32
    %2 = arith.minsi %1, %c0_i32 : i32
    %c0_i32_0 = arith.constant 0 : i32
    %c0_i32_1 = arith.constant 0 : i32
    return %2, %c0_i32_0 : i32, i32
  }
  func.func @transform_4(%arg0: i32, %arg1: i32) -> (i32, i32, i32) {
    %c0_i32 = arith.constant 0 : i32
    %c0_i32_0 = arith.constant 0 : i32
    %c0_i32_1 = arith.constant 0 : i32
    return %arg0, %c0_i32, %c0_i32_0 : i32, i32, i32
  }
  func.func @transform_5(%arg0: i32, %arg1: i32) -> (i32, i32, i32) {
    %c0_i32 = arith.constant 0 : i32
    %c0_i32_0 = arith.constant 0 : i32
    %c0_i32_1 = arith.constant 0 : i32
    return %arg0, %c0_i32, %c0_i32_0 : i32, i32, i32
  }
}

</mosaic_0001>

<bundles_post_ra>
// kernel: tpu_custom_call.1
= control target key start
LH: loop header
LB: loop body
LE: loop exit
PB: predicated region body
PF: predicated region fallthrough
CT: control target
= control target key end

     0   :  { %s1589_s0 = inlined_call_operand.hbm [shape: f32[4,8], index: 0, kind: input, shape index: {}]   ;;  %s1590_s1 = inlined_call_operand.hbm [shape: f32[4,8], index: 1, kind: input, shape index: {}]   ;;  %s1591_s2 = inlined_call_operand.hbm [shape: f32[24,32], index: 2, kind: input, shape index: {}]   ;;  %s1592_s3 = inlined_call_operand.hbm [shape: f32[24,32], index: 3, kind: input, shape index: {}]   ;;  %s1593_s4 = inlined_call_operand.hbm [shape: f32[2,8,128], index: 4, kind: output, shape index: {0}]   ;;  %s1594_s5 = inlined_call_operand.hbm [shape: f32[2,8,128], index: 5, kind: output, shape index: {1}]  }
   0x1   :  { %1599 = sst [smem:[#allocation23_spill]] %s1589_s0 }
   0x2   :  { %1600 = sst [smem:[#allocation24_spill]] %s1590_s1 }
   0x3   :  { %11 = vsyncpa [#allocation5], 0 }
   0x4   :  { %13 = vsyncpa [#allocation5 + $0x1], 0 }
   0x5   :  { %14 = vsyncpa [#allocation8], 0 }
   0x6   :  { %16 = vsyncpa [#allocation8 + $0x1], 0 }
   0x7   :  { %17 = vsyncpa [#allocation11], 0 }
   0x8   :  { %19 = vsyncpa [#allocation11 + $0x1], 0 }
   0x9   :  { %20 = vsyncpa [#allocation6], 0 }
   0xa   :  { %22 = vsyncpa [#allocation6 + $0x1], 0 }
   0xb   :  { %23 = vsyncpa [#allocation14], 0 }
   0xc   :  { %25 = vsyncpa [#allocation14 + $0x1], 0  ;;  %s1255_s18 = smov 0   ;;  %s1257_s19 = smov 0  }
   0xd   :  { %s1259_s20 = smov 0   ;;  %s1261_s21 = smov 0  }
   0xe   :  { %s1263_s22 = smov 0   ;;  %s1265_s23 = smov 0  }
   0xf   :  { %s1267_s24 = smov 0   ;;  %s1269_s25 = smov 0  }
  0x10 LB: > { %1601 = sst [smem:[#allocation20_spill]] %s1210_s24  ;;  %s1294_s26 = sadd.s32 4294967295, %s1214_s25   ;;  %s1214_s25 = sphi %s1269_s25, %s31_s25   ;;  %s1210_s24 = sphi %s1267_s24, %s1620_s24   ;;  %s1206_s23 = sphi %s1265_s23, %s1619_s23   ;;  %s1202_s22 = sphi %s1263_s22, %s1579_s22   ;;  %s1198_s21 = sphi %s1261_s21, %s1624_s21   ;;  %s1194_s20 = sphi %s1259_s20, %s1623_s20   ;;  %s1190_s19 = sphi %s1257_s19, %s1622_s19   ;;  %s1186_s18 = sphi %s1255_s18, %s1621_s18  }
  0x11   : > { %s803_s27 = sadd.s32 4294967294, %s1214_s25   ;;  %s43_s28 = sadd.s32 1, %s1210_s24 }
  0x12   : > { %p45_p0 = scmp.ge.s32.totalorder %s43_s28, 2  ;;  %p1183_p1 = scmp.ne.s32.totalorder %s1202_s22, 0 }
  0x13   : > { %p64_p2 = scmp.eq.s32.totalorder %s1214_s25, 0  ;;  %p69_p3 = scmp.ne.s32.totalorder %s1202_s22, %s1198_s21 }
  0x14   : > { %s1626_s28 = smov (%p45_p0, %s43_s28), 0  ;;  %p70_p5 = scmp.eq.s32.totalorder %s1294_s26, 0 }
  0x15   : > { %1602 = sst [smem:[#allocation21_spill]] %s1626_s28  ;;  %p1303_p4 = por %p1183_p1, %p64_p2 }
  0x16   : > { %p1308_p6 = por %p70_p5, %p69_p3  ;;  %s175_s6 = ssub.s32 %s1210_s24, %s1626_s28 }
  0x17   : > { %p176_p7 = scmp.eq.s32.totalorder %s175_s6, 0  ;;  %s178_s7 = sadd.s32 1, %s1194_s20 }
  0x18   : > { %s1604_s30 = scalar_select %p1308_p6, 1, 0 }
  0x19   : > { %s1316_s8 = scalar_select %p176_p7, %s1194_s20, %s178_s7  }
  0x1a   : > { %p188_p8 = scmp.ne.s32.totalorder %s1194_s20, %s1190_s19  ;;  %p189_p9 = scmp.eq.s32.totalorder %s1294_s26, 1 }
  0x1b   : > { %1605 = sst [smem:[#allocation22_spill]] %s1316_s8  ;;  %p194_p10 = scmp.ne.s32.totalorder %s1190_s19, %s1186_s18 }
  0x1c   : > { %p195_p11 = scmp.eq.s32.totalorder %s803_s27, 1  ;;  %p1323_p12 = por %p189_p9, %p188_p8 }
  0x1d   : > { %p866_p1 = scmp.lt.s32.totalorder %s1214_s25, 2  ;;  %s262_s12 = sand.u32 1, %s1214_s25  }
  0x1e   : > { %s1606_s9 = scalar_select %p1323_p12, 1, 0 }
  0x1f   : > { %p1328_p0 = por %p195_p11, %p194_p10  ;;  %p1335_p2 = pnand %p866_p1, %p1303_p4 }
  0x20   : > { %s1216_s13 = smov [#allocation7]   ;;  %s1340_s15 = scalar_lea.sflag [#allocation8], %s262_s12 }
  0x21   : > { %s1607_s10 = scalar_select %p1328_p0, 1, 0 }
  0x22   : > { %s276_s14 = sshll.u32 %s1216_s13, 4  ;;  %s1609_s1 = sld [smem:[#allocation24_spill]]  ;;  %s277_s14 = int_to_ptr.vmem [resolvable:$true] %s276_s14 }
  0x23   : > { %p1350_p4 = pneg %p1335_p2 }
  0x28   : > { %s963_s21 = scalar_lea.hbm %s1609_s1, 64 }
  0x29   : > { %p964_p3 = scmp.ne.s32.totalorder %s1609_s1, %s963_s21  ;;  %p970_p8 = scmp.lt.s32.totalorder %s963_s21, %s963_s21 }
  0x2b   : > { %p966_p5 = pnand %p1350_p4, %p964_p3 }
  0x2d   : > { %p967_p7 = pneg %p966_p5 }
  0x2f   : > { %p972_p9 = pnand %p970_p8, %p967_p7 }
  0x31   : > { %975 = shalt.err (!%p972_p9)
}
  0x32   : > { %s976_s7 = scalar_lea.vmem %s277_s14, 64  ;;  %s983_s12 = scalar_lea.vmem %s277_s14, 128 }
  0x33   : > { %p977_p10 = scmp.ne.s32.totalorder %s277_s14, %s976_s7  ;;  %p984_p13 = scmp.lt.s32.totalorder %s277_s14, %s277_s14 }
  0x34   : > { %p985_p0 = scmp.lt.s32.totalorder %s983_s12, %s976_s7 }
  0x35   : > { %p979_p11 = pnand %p977_p10, %p1350_p4 }
  0x36   : > { %p986_p12 = por %p985_p0, %p984_p13 }
  0x37   : > { %p980_p1 = pneg %p979_p11 }
  0x39   : > { %p987_p6 = pnand %p986_p12, %p980_p1 }
  0x3b   : > { %990 = shalt.err (!%p987_p6)
}
  0x3c   : > { %852 = dma.hbm_to_vmem [thread:$0]  (!%p1335_p2), %s1609_s1, 64, %s277_s14, %s1340_s15  }
  0x3d   : > { %p812_p3 = scmp.ge.s32.totalorder %s1214_s25, 1  ;;  %p329_p5 = scmp.lt.s32.totalorder %s1214_s25, 3 }
  0x3e   : > { %s1217_s21 = smov [#allocation4]   ;;  %s1612_s0 = sld [smem:[#allocation23_spill]] }
  0x3f   : > { %p1366_p7 = pnand %p812_p3, %p329_p5  ;;  %s255_s27 = sshll.u32 %s1217_s21, 4  ;;  %s256_s27 = int_to_ptr.vmem [resolvable:$true] %s255_s27 }
  0x41   : > { %s1611_s17 = scalar_select %p1366_p7, 1, 0 }
  0x44   : > { %s991_s12 = scalar_lea.hbm %s1612_s0, 64 }
  0x45   : > { %p992_p6 = scmp.ne.s32.totalorder %s1612_s0, %s991_s12  ;;  %p998_p0 = scmp.lt.s32.totalorder %s991_s12, %s991_s12 }
  0x47   : > { %p994_p12 = pnand %p992_p6, %p1350_p4 }
  0x49   : > { %p995_p13 = pneg %p994_p12 }
  0x4b   : > { %p1000_p8 = pnand %p998_p0, %p995_p13 }
  0x4d   : > { %1003 = shalt.err (!%p1000_p8)
}
  0x4e   : > { %s1004_s14 = scalar_lea.vmem %s256_s27, 64  ;;  %s1011_s13 = scalar_lea.vmem %s256_s27, 128 }
  0x4f   : > { %p1005_p9 = scmp.ne.s32.totalorder %s256_s27, %s1004_s14  ;;  %p1012_p1 = scmp.lt.s32.totalorder %s256_s27, %s256_s27 }
  0x50   : > { %p1013_p3 = scmp.lt.s32.totalorder %s1011_s13, %s1004_s14 }
  0x51   : > { %p1007_p10 = pnand %p1005_p9, %p1350_p4 }
  0x52   : > { %p1014_p5 = por %p1013_p3, %p1012_p1 }
  0x53   : > { %p1008_p11 = pneg %p1007_p10 }
  0x55   : > { %p1015_p7 = pnand %p1014_p5, %p1008_p11 }
  0x57   : > { %1018 = shalt.err (!%p1015_p7)
}
  0x58   : > { %849 = dma.hbm_to_vmem [thread:$0]  (!%p1335_p2), %s1612_s0, 64, %s256_s27, [#allocation5]  }
  0x59   : > { %s1218_s16 = smov [#allocation9]   ;;  %s1019_s12 = scalar_lea.hbm %s1591_s2, 384 }
  0x5a   : > { %s297_s21 = sshll.u32 %s1218_s16, 4  ;;  %p1020_p6 = scmp.ne.s32.totalorder %s1591_s2, %s1019_s12  ;;  %s298_s21 = int_to_ptr.vmem [resolvable:$true] %s297_s21 }
  0x5b   : > { %p1026_p13 = scmp.lt.s32.totalorder %s1019_s12, %s1019_s12 }
  0x5c   : > { %p1022_p7 = pnand %p1020_p6, %p1350_p4 }
  0x5e   : > { %p1023_p12 = pneg %p1022_p7 }
  0x60   : > { %p1028_p0 = pnand %p1026_p13, %p1023_p12 }
  0x62   : > { %1031 = shalt.err (!%p1028_p0)
}
  0x63   : > { %s1032_s14 = scalar_lea.vmem %s298_s21, 384  ;;  %s1039_s27 = scalar_lea.vmem %s298_s21, 768 }
  0x64   : > { %p1033_p8 = scmp.ne.s32.totalorder %s298_s21, %s1032_s14  ;;  %p1040_p11 = scmp.lt.s32.totalorder %s298_s21, %s298_s21 }
  0x65   : > { %p1041_p1 = scmp.lt.s32.totalorder %s1039_s27, %s1032_s14 }
  0x66   : > { %p1035_p9 = pnand %p1033_p8, %p1350_p4 }
  0x67   : > { %p1042_p3 = por %p1041_p1, %p1040_p11 }
  0x68   : > { %p1036_p10 = pneg %p1035_p9 }
  0x6a   : > { %p1043_p5 = pnand %p1042_p3, %p1036_p10 }
  0x6c   : > { %1046 = shalt.err (!%p1043_p5)
}
  0x6d   : > { %s1219_s1 = smov 128   ;;  %s1220_s8 = smov 8  }
  0x6e   : > { %855 = dma.hbm_to_vmem [thread:$0]  (!%p1335_p2), %s1591_s2, 384, %s298_s21, %s1340_s15, %s1219_s1, %s1219_s1, %s1220_s8  }
  0x6f   : > { %s1221_s28 = smov [#allocation10]   ;;  %s1047_s12 = scalar_lea.hbm %s1592_s3, 384 }
  0x70   : > { %s321_s16 = sshll.u32 %s1221_s28, 4  ;;  %p1048_p6 = scmp.ne.s32.totalorder %s1592_s3, %s1047_s12  ;;  %s322_s16 = int_to_ptr.vmem [resolvable:$true] %s321_s16 }
  0x71   : > { %p1054_p13 = scmp.lt.s32.totalorder %s1047_s12, %s1047_s12 }
  0x72   : > { %p1050_p7 = pnand %p1048_p6, %p1350_p4 }
  0x74   : > { %p1051_p12 = pneg %p1050_p7 }
  0x76   : > { %p1056_p0 = pnand %p1054_p13, %p1051_p12 }
  0x78   : > { %1059 = shalt.err (!%p1056_p0)
}
  0x79   : > { %s1060_s0 = scalar_lea.vmem %s322_s16, 384  ;;  %s1067_s15 = scalar_lea.vmem %s322_s16, 768 }
  0x7a   : > { %p1061_p8 = scmp.ne.s32.totalorder %s322_s16, %s1060_s0  ;;  %p1068_p11 = scmp.lt.s32.totalorder %s322_s16, %s322_s16 }
  0x7b   : > { %p1069_p1 = scmp.lt.s32.totalorder %s1067_s15, %s1060_s0 }
  0x7c   : > { %p1063_p9 = pnand %p1061_p8, %p1350_p4 }
  0x7d   : > { %p1070_p3 = por %p1069_p1, %p1068_p11 }
  0x7e   : > { %p1064_p10 = pneg %p1063_p9 }
  0x80   : > { %p1071_p5 = pnand %p1070_p3, %p1064_p10 }
  0x82   : > { %1074 = shalt.err (!%p1071_p5)
}
  0x83   : > { %858 = dma.hbm_to_vmem [thread:$0]  (!%p1335_p2), %s1592_s3, 384, %s322_s16, [#allocation11], %s1219_s1, %s1219_s1, %s1220_s8  }
  0x84   : > { %p1613_p6 = scmp.ne.s32.totalorder %s1611_s17, 0 }
  0x85   : > { %s335_s29 = sand.u32 (!%p1613_p6), 1, %s1202_s22   ;;  %p1614_p4 = scmp.ne.s32.totalorder (!%p1613_p6), %s1604_s30, 0 }
  0x86   : > { %333 = sbr.rel (%p1613_p6) target bundleno = 573 (0x23d), region = 36  ;;  %s813_s24 = sshll.u32 (!%p1613_p6), %s335_s29, 2 }
  0x87   : > { %s336_s28 = scalar_lea.sflag (!%p1613_p6), [#allocation5], %s335_s29  ;;  %s1419_s6 = scalar_lea.vmem (!%p1613_p6), [#allocation4], %s813_s24 }
  0x8b   : > { %1164 = dma.done.wait (%p1614_p4), %s336_s28, 64  }
  0x8c   : > { %1166 = vsyncadd (%p1614_p4), %s336_s28, 4294967232  ;;  %s344_s0 = sand.u32 1, %s1294_s26   ;;  %s1426_s1 = scalar_lea.vmem [#allocation7], %s813_s24 }
  0x8d   : > { %s345_s11 = scalar_lea.sflag [#allocation8], %s344_s0 }
  0x8e   : > { %1168 = dma.done.wait (%p1614_p4), %s345_s11, 448  }
  0x8f   : > { %1170 = vsyncadd (%p1614_p4), %s345_s11, 4294966848  ;;  %s829_s17 = smul.u32 24, %s335_s29  ;;  %s363_s16 = scalar_lea.sflag [#allocation11], %s335_s29 }
  0x91   : > { %s357_s8 = scalar_lea.vmem [#allocation9], %s829_s17  ;;  %s366_s7 = scalar_lea.vmem [#allocation10], %s829_s17 }
  0x92   : > { %1172 = dma.done.wait (%p1614_p4), %s363_s16, 384  }
  0x93   : > { %1174 = vsyncadd (%p1614_p4), %s363_s16, 4294966912  ;;  %s1437_s26 = sand.u32 1, %s1190_s19   ;;  %vm431_vm0 = vcmask 57344   ;;  %vm433_vm1 = vcmask 261120   ;;  %p437_p2 = scmp.lt.s32.totalorder %s1206_s23, 1  ;;  %v1222_v0 = vmov 0.0  }
  0x94   : > { %s815_s12 = sshll.u32 %s1437_s26, 3  ;;  %432 = vst.msk [vmem:[#allocation2] sm:$0x1] %vm431_vm0, %v1222_v0  ;;  %v1447_v1 = vld [vmem:[%s366_s7] sm:$0xff] (%p437_p2)  ;;  %v1449_v2 = vld [vmem:[%s357_s8] sm:$0xff] (%p437_p2)  ;;  %v1451_v3 = vld [vmem:[%s366_s7 + $0x8] sm:$0xff] (%p437_p2) }
  0x95   : > { %434 = vst.msk [vmem:[#allocation3] sm:$0xff] %vm433_vm1, %v1222_v0  ;;  %s1443_s14 = scalar_lea.vmem [#allocation12], %s815_s12  ;;  %s1445_s27 = scalar_lea.vmem [#allocation13], %s815_s12  ;;  %v526_v4 = vmul.f32 (%p437_p2), %v1447_v1, %v1447_v1  ;;  %v504_v5 = vmul.f32 (%p437_p2), %v1449_v2, %v1449_v2  ;;  %v527_v6 = vmul.f32 (%p437_p2), %v1451_v3, %v1451_v3  ;;  %v1459_v7 = vld [vmem:[%s357_s8 + $0x8] sm:$0xff] (%p437_p2)  ;;  %v1461_v8 = vld [vmem:[%s366_s7 + $0x10] sm:$0xff] (%p437_p2)  ;;  %v1465_v10 = vld [vmem:[%s357_s8 + $0x10] sm:$0xff] (%p437_p2) }
  0x96   : > { %441 = sbr.rel (!%p437_p2) target bundleno = 327 (0x147), region = 60  ;;  %v505_v9 = vmul.f32 (%p437_p2), %v1459_v7, %v1459_v7  ;;  %v442_v11 = vld [vmem:[%s1419_s6] sm:$0xf] (%p437_p2)  ;;  %v443_v12 = vld [vmem:[%s1426_s1] sm:$0xf] (%p437_p2)  ;;  %vm446_vm2 = vcmask (%p437_p2), 60416   ;;  %v528_v16 = vmul.f32 (%p437_p2), %v1461_v8, %v1461_v8  ;;  %v506_v20 = vmul.f32 (%p437_p2), %v1465_v10, %v1465_v10 }
  0x97   : > { %v529_v13 = vsel (%p437_p2), %vm433_vm1, %v526_v4, 0.0  ;;  %v508_v14 = vsel (%p437_p2), %vm433_vm1, %v504_v5, 0.0  ;;  %v444_v15 = vmul.f32 (%p437_p2), 0.5, %v442_v11  ;;  %v445_v17 = vmul.f32 (%p437_p2), 0.5, %v443_v12 }
  0x98   : > { %530 = vadd.xlane.f32.xlu1 (%p437_p2), %v529_v13  ;;  %509 = vadd.xlane.f32.xlu0 (%p437_p2), %v508_v14  ;;  %v532_v18 = vsel (%p437_p2), %vm433_vm1, %v527_v6, 0.0  ;;  %v511_v19 = vsel (%p437_p2), %vm433_vm1, %v505_v9, 0.0  ;;  %v535_v26 = vsel (%p437_p2), %vm433_vm1, %v528_v16, 0.0  ;;  %v514_v27 = vsel (%p437_p2), %vm433_vm1, %v506_v20, 0.0 }
  0x99   : > { %v447_v21 = vsel (%p437_p2), %vm446_vm2, %v444_v15, -inf  ;;  %v466_v23 = vsel (%p437_p2), %vm446_vm2, %v445_v17, -inf }
  0x9a   : > { %v448_v22 = vrot.slane (%p437_p2), %v447_v21, 4  ;;  %v467_v24 = vrot.slane (%p437_p2), %v466_v23, 4 }
  0x9b   : > { %v487_v11 = vld [vmem:[#allocation2] sm:$0x1] }
  0x9c   : > { %533 = vadd.xlane.f32.xlu1 %v532_v18  ;;  %512 = vadd.xlane.f32.xlu0 %v511_v19  ;;  %v449_v25 = vmax.f32 %v447_v21, %v448_v22  ;;  %v468_v28 = vmax.f32 %v466_v23, %v467_v24 }
  0x9e   : > { %v450_v29 = vrot.slane %v449_v25, 2  ;;  %v469_v30 = vrot.slane %v468_v28, 2 }
  0xa0   : > { %536 = vadd.xlane.f32.xlu1 %v535_v26  ;;  %515 = vadd.xlane.f32.xlu0 %v514_v27  ;;  %v451_v31 = vmax.f32 %v449_v25, %v450_v29  ;;  %v470_v32 = vmax.f32 %v468_v28, %v469_v30 }
  0xa2   : > { %v452_v33 = vrot.slane %v451_v31, 1  ;;  %v471_v34 = vrot.slane %v470_v32, 1 }
  0xa4   : > { %v453_v35 = vmax.f32 %v451_v31, %v452_v33  ;;  %v472_v36 = vmax.f32 %v470_v32, %v471_v34 }
  0xa6   : > { %v454_v37 = vsub.f32 %v444_v15, %v453_v35  ;;  %v473_v38 = vsub.f32 %v445_v17, %v472_v36 }
  0xa8   : > { %v455_v39 = vmul.f32 1.442695, %v454_v37  ;;  %v474_v40 = vmul.f32 1.442695, %v473_v38 }
  0xaa   : > { %943 = vpow2.f32 %v455_v39 }
  0xab   : > { %945 = vpow2.f32 %v474_v40 }
  0xb7   : > { %v944_v41 = vpop.eup %943 }
  0xb8   : > { %v946_v42 = vpop.eup %945  ;;  %v457_v43 = vsel %vm446_vm2, %v944_v41, 0.0 }
  0xb9   : > { %v458_v44 = vrot.slane %v457_v43, 4  ;;  %v476_v45 = vsel %vm446_vm2, %v946_v42, 0.0 }
  0xba   : > { %v477_v46 = vrot.slane %v476_v45, 4 }
  0xbb   : > { %v459_v47 = vadd.f32 %v458_v44, %v457_v43 }
  0xbc   : > { %v478_v48 = vadd.f32 %v477_v46, %v476_v45 }
  0xbd   : > { %v460_v49 = vrot.slane %v459_v47, 2 }
  0xbe   : > { %v479_v50 = vrot.slane %v478_v48, 2 }
  0xbf   : > { %v461_v51 = vadd.f32 %v460_v49, %v459_v47 }
  0xc0   : > { %v480_v52 = vadd.f32 %v479_v50, %v478_v48 }
  0xc1   : > { %v462_v53 = vrot.slane %v461_v51, 1 }
  0xc2   : > { %v481_v54 = vrot.slane %v480_v52, 1 }
  0xc3   : > { %v463_v55 = vadd.f32 %v462_v53, %v461_v51 }
  0xc4   : > { %v482_v56 = vadd.f32 %v481_v54, %v480_v52 }
  0xc5   : > { %947 = vrcp.f32 %v463_v55 }
  0xc6   : > { %949 = vrcp.f32 %v482_v56 }
  0xd2   : > { %v948_v57 = vpop.eup %947 }
  0xd3   : > { %v950_v58 = vpop.eup %949  ;;  %v465_v59 = vmul.f32 %v948_v57, %v944_v41 }
  0xd4   : > { %v484_v60 = vmul.f32 %v950_v58, %v946_v42 }
  0xd6   : > { %v485_v61 = vsub.f32 %v465_v59, %v484_v60 }
  0xd8   : > { %v486_v62 = vmul.f32 %v485_v61, %v485_v61 }
  0xda   : > { %v488_v63 = vsel %vm446_vm2, %v486_v62, 0.0 }
  0xdb   : > { %v489_v0 = vrot.slane %v488_v63, 4 }
  0xdd   : > { %v490_v4 = vadd.f32 %v489_v0, %v488_v63 }
  0xdf   : > { %v491_v5 = vrot.slane %v490_v4, 2 }
  0xe1   : > { %v492_v6 = vadd.f32 %v491_v5, %v490_v4 }
  0xe3   : > { %v493_v9 = vrot.slane %v492_v6, 1 }
  0xe5   : > { %v494_v12 = vadd.f32 %v493_v9, %v492_v6 }
  0xe7   : > { %v495_v13 = vadd.f32 %v494_v12, %v487_v11 }
  0xe9   : > { %497 = vst.msk [vmem:[#allocation2] sm:$0x1] %vm431_vm0, %v495_v13 }
 0x121   : > { %v531_v14 = vpop.xlane.xlu1 %530  ;;  %v510_v15 = vpop.xlane.xlu0 %509 }
 0x122   : > { %v538_v16 = vadd.f32 1e-12, %v531_v14  ;;  %v517_v17 = vadd.f32 1e-12, %v510_v15 }
 0x124   : > { %951 = vrsqrt.f32 %v538_v16 }
 0x125   : > { %953 = vrsqrt.f32 %v517_v17  ;;  %v534_v18 = vpop.xlane.xlu1 %533  ;;  %v513_v19 = vpop.xlane.xlu0 %512 }
 0x126   : > { %v539_v20 = vadd.f32 1e-12, %v534_v18  ;;  %v518_v21 = vadd.f32 1e-12, %v513_v19 }
 0x128   : > { %955 = vrsqrt.f32 %v539_v20 }
 0x129   : > { %957 = vrsqrt.f32 %v518_v21  ;;  %v537_v22 = vpop.xlane.xlu1 %536  ;;  %v516_v23 = vpop.xlane.xlu0 %515 }
 0x12a   : > { %v540_v24 = vadd.f32 1e-12, %v537_v22  ;;  %v519_v25 = vadd.f32 1e-12, %v516_v23 }
 0x12c   : > { %959 = vrsqrt.f32 %v540_v24 }
 0x12d   : > { %961 = vrsqrt.f32 %v519_v25 }
 0x131   : > { %v952_v26 = vpop.eup %951 }
 0x132   : > { %v954_v27 = vpop.eup %953  ;;  %v544_v28 = vmul.f32 %v952_v26, %v1447_v1 }
 0x133   : > { %v523_v29 = vmul.f32 %v954_v27, %v1449_v2 }
 0x135   : > { %v956_v30 = vpop.eup %955  ;;  %v547_v33 = vsub.f32 %v544_v28, %v523_v29 }
 0x136   : > { %v958_v31 = vpop.eup %957  ;;  %v545_v32 = vmul.f32 %v956_v30, %v1451_v3  ;;  %v553_v3 = vld [vmem:[#allocation3] sm:$0xff] }
 0x137   : > { %v524_v34 = vmul.f32 %v958_v31, %v1459_v7  ;;  %v550_v39 = vmul.f32 %v547_v33, %v547_v33 }
 0x139   : > { %v960_v35 = vpop.eup %959  ;;  %v548_v36 = vsub.f32 %v545_v32, %v524_v34  ;;  %v554_v2 = vsel %vm433_vm1, %v550_v39, 0.0 }
 0x13a   : > { %v962_v37 = vpop.eup %961  ;;  %v546_v38 = vmul.f32 %v960_v35, %v1461_v8 }
 0x13b   : > { %v551_v40 = vmul.f32 %v548_v36, %v548_v36  ;;  %v525_v41 = vmul.f32 %v962_v37, %v1465_v10 }
 0x13d   : > { %v555_v1 = vsel %vm433_vm1, %v551_v40, 0.0  ;;  %v549_v42 = vsub.f32 %v546_v38, %v525_v41 }
 0x13e   : > { %v556_v44 = vadd.f32 %v555_v1, %v554_v2 }
 0x13f   : > { %v552_v43 = vmul.f32 %v549_v42, %v549_v42 }
 0x141   : > { %v557_v45 = vsel %vm433_vm1, %v552_v43, 0.0 }
 0x142   : > { %v558_v7 = vadd.f32 %v557_v45, %v556_v44 }
 0x144   : > { %v559_v46 = vadd.f32 %v558_v7, %v553_v3 }
 0x146   : > { %560 = vst.msk [vmem:[#allocation3] sm:$0xff] %vm433_vm1, %v559_v46 }
 0x147 PF: > { %v564_v8 = vld [vmem:[#allocation2] sm:$0x1]  ;;  %s820_s30 = sshll.u32 %s1206_s23, 7  ;;  %s613_s21 = sshll.u32 %s1443_s14, 4  ;;  %s1505_s21 = int_to_ptr.vmem [resolvable:$true] %s613_s21 }
 0x148   : > { %v566_v48 = vsel %vm431_vm0, %v564_v8, 0.0  ;;  %s1502_s28 = scalar_lea.hbm %s1593_s4, %s820_s30  ;;  %s626_s6 = sshll.u32 %s1445_s27, 4  ;;  %s1516_s6 = int_to_ptr.vmem [resolvable:$true] %s626_s6 }
 0x149   : > { %567 = vadd.xlane.f32.xlu0 %v566_v48  ;;  %s1513_s1 = scalar_lea.hbm %s1594_s5, %s820_s30  ;;  %s595_s8 = scalar_lea.sflag [#allocation6], %s1437_s26 }
 0x14a   : > { %s1075_s16 = scalar_lea.vmem %s1505_s21, 128  ;;  %p1615_p12 = scmp.ne.s32.totalorder %s1606_s9, 0 }
 0x14b   : > { %p1076_p7 = scmp.ne.s32.totalorder %s1505_s21, %s1075_s16  ;;  %s1223_s7 = smov [#allocation12]  }
 0x14c   : > { %s1079_s12 = sshll.u32 %s1223_s7, 4  ;;  %s1080_s12 = int_to_ptr.vmem [resolvable:$false] %s1079_s12 }
 0x14d   : > { %v579_v47 = vld [vmem:[#allocation3] sm:$0xff]  ;;  %p1077_p13 = pnand %p1076_p7, %p1615_p12  ;;  %p1082_p8 = scmp.lt.s32.totalorder %s1505_s21, %s1080_s12 }
 0x14e   : > { %v581_v10 = vsel %vm433_vm1, %v579_v47, 0.0 }
 0x14f   : > { %582 = vadd.xlane.f32.xlu0 %v581_v10  ;;  %p1078_p0 = pneg %p1077_p13 }
 0x1d2   : > { %v568_v49 = vpop.xlane.xlu0 %567 }
 0x1d3   : > { %v569_v50 = vrot.slane %v568_v49, 4 }
 0x1d5   : > { %v570_v51 = vadd.f32 %v569_v50, %v568_v49 }
 0x1d7   : > { %v571_v53 = vrot.slane %v570_v51, 2 }
 0x1d8   : > { %v583_v52 = vpop.xlane.xlu0 %582 }
 0x1d9   : > { %v584_v54 = vrot.slane %v583_v52, 4  ;;  %v572_v56 = vadd.f32 %v571_v53, %v570_v51 }
 0x1db   : > { %v585_v55 = vadd.f32 %v584_v54, %v583_v52  ;;  %v573_v58 = vrot.slane %v572_v56, 1 }
 0x1dd   : > { %v586_v57 = vrot.slane %v585_v55, 2  ;;  %v574_v60 = vadd.f32 %v573_v58, %v572_v56 }
 0x1df   : > { %v587_v59 = vadd.f32 %v586_v57, %v585_v55  ;;  %830 = vpush %v574_v60 }
 0x1e1   : > { %v588_v61 = vrot.slane %v587_v59, 1 }
 0x1e3   : > { %v589_v62 = vadd.f32 %v588_v61, %v587_v59 }
 0x1e5   : > { %832 = vpush %v589_v62 }
 0x210   : > { %s831_s15 = spop %830 }
 0x211   : > { %s576_s13 = smul.f32 0.125, %s831_s15 }
 0x213   : > { %v577_v63 = vstv %s576_s13 }
 0x214   : > { %578 = vst [vmem:[%s1443_s14] sm:$0xff] %v577_v63  ;;  %s1081_s14 = scalar_lea.vmem %s1080_s12, 256 }
 0x215   : > { %p1083_p9 = scmp.lt.s32.totalorder %s1081_s14, %s1075_s16 }
 0x216   : > { %s1508_s0 = spop %832 }
 0x217   : > { %s591_s17 = smul.f32 0.0013020834, %s1508_s0  ;;  %p1084_p10 = por %p1083_p9, %p1082_p8 }
 0x219   : > { %p1085_p11 = pnand %p1084_p10, %p1078_p0 }
 0x21b   : > { %1088 = shalt.err (!%p1085_p11)
}
 0x21c   : > { %s1089_s30 = scalar_lea.hbm %s1502_s28, 128  ;;  %s1093_s29 = scalar_lea.hbm %s1593_s4, 256 }
 0x21d   : > { %p1090_p1 = scmp.ne.s32.totalorder %s1502_s28, %s1089_s30  ;;  %p1094_p6 = scmp.lt.s32.totalorder %s1502_s28, %s1593_s4 }
 0x21e   : > { %p1095_p4 = scmp.lt.s32.totalorder %s1093_s29, %s1089_s30 }
 0x21f   : > { %p1091_p3 = pnand %p1090_p1, %p1615_p12 }
 0x220   : > { %p1096_p2 = por %p1095_p4, %p1094_p6 }
 0x221   : > { %p1092_p5 = pneg %p1091_p3 }
 0x223   : > { %p1097_p7 = pnand %p1096_p2, %p1092_p5 }
 0x225   : > { %1100 = shalt.err (!%p1097_p7)
}
 0x226   : > { %842 = dma.vmem_to_hbm [thread:$0]  (%p1615_p12), %s1505_s21, 128, %s1502_s28, %s595_s8   ;;  %v592_v0 = vstv %s591_s17 }
 0x227   : > { %593 = vst [vmem:[%s1445_s27] sm:$0xff] %v592_v0  ;;  %s600_s23 = scalar_lea.sflag [#allocation14], %s1437_s26  ;;  %s1101_s11 = scalar_lea.vmem %s1516_s6, 128 }
 0x228   : > { %p1102_p13 = scmp.ne.s32.totalorder %s1516_s6, %s1101_s11  ;;  %s1224_s16 = smov [#allocation13]  }
 0x229   : > { %s1105_s7 = sshll.u32 %s1224_s16, 4  ;;  %s1106_s7 = int_to_ptr.vmem [resolvable:$false] %s1105_s7 }
 0x22a   : > { %p1103_p0 = pnand %p1102_p13, %p1615_p12  ;;  %s1107_s12 = scalar_lea.vmem %s1106_s7, 256 }
 0x22b   : > { %p1108_p9 = scmp.lt.s32.totalorder %s1516_s6, %s1106_s7  ;;  %p1109_p10 = scmp.lt.s32.totalorder %s1107_s12, %s1101_s11 }
 0x22c   : > { %p1104_p8 = pneg %p1103_p0 }
 0x22d   : > { %p1110_p11 = por %p1109_p10, %p1108_p9 }
 0x22f   : > { %p1111_p1 = pnand %p1110_p11, %p1104_p8 }
 0x231   : > { %1114 = shalt.err (!%p1111_p1)
}
 0x232   : > { %s1115_s27 = scalar_lea.hbm %s1513_s1, 128  ;;  %s1119_s28 = scalar_lea.hbm %s1594_s5, 256 }
 0x233   : > { %p1116_p3 = scmp.ne.s32.totalorder %s1513_s1, %s1115_s27  ;;  %p1120_p4 = scmp.lt.s32.totalorder %s1513_s1, %s1594_s5 }
 0x234   : > { %p1121_p2 = scmp.lt.s32.totalorder %s1119_s28, %s1115_s27 }
 0x235   : > { %p1117_p5 = pnand %p1116_p3, %p1615_p12 }
 0x236   : > { %p1122_p7 = por %p1121_p2, %p1120_p4 }
 0x237   : > { %p1118_p6 = pneg %p1117_p5 }
 0x239   : > { %p1123_p13 = pnand %p1122_p7, %p1118_p6 }
 0x23b   : > { %1126 = shalt.err (!%p1123_p13)
}
 0x23c   : > { %843 = dma.vmem_to_hbm [thread:$0]  (%p1615_p12), %s1516_s6, 128, %s1513_s1, %s600_s23  }
 0x23d PF: > { %s638_s14 = sand.u32 1, %s1186_s18   ;;  %p1616_p0 = scmp.ne.s32.totalorder %s1607_s10, 0 }
 0x23e   : > { %p1617_p8 = scmp.ge.s32.totalorder %s1214_s25, 2  ;;  %s639_s30 = scalar_lea.sflag [#allocation6], %s638_s14 }
 0x240   : > { %p860_p9 = pnand %p1617_p8, %p1616_p0 }
 0x242   : > { %p861_p10 = pneg %p860_p9 }
 0x244   : > { %1176 = dma.done.wait (%p861_p10), %s639_s30, 128  }
 0x245   : > { %1178 = vsyncadd (%p861_p10), %s639_s30, 4294967168  ;;  %s648_s15 = scalar_lea.sflag [#allocation14], %s638_s14 }
 0x246   : > { %1180 = dma.done.wait (%p861_p10), %s648_s15, 128  }
 0x247   : > { %1182 = vsyncadd (%p861_p10), %s648_s15, 4294967168  ;;  %s31_s25 = sadd.s32 1, %s1214_s25   ;;  %s1618_s9 = sld [smem:[#allocation22_spill]] }
 0x248   : > { %p28_p11 = scmp.ge.s32.totalorder %s31_s25, 4   ;;  %s1619_s23 = sld [smem:[#allocation20_spill]] }
 0x249   : > { %s1620_s24 = sld [smem:[#allocation21_spill]]  ;;  %s1621_s18 = smov %s1190_s19 }
 0x24a   : > { %s1622_s19 = smov %s1194_s20  ;;  %s1624_s21 = smov %s1202_s22 }
 0x24b   : > { %s1579_s22 = smov 0   ;;  %30 = sbr.rel (!%p28_p11) target bundleno = 16 (0x10), region = 147 }
 0x24d   : > { %s1623_s20 = smov %s1618_s9 }
 0x250   :  { %653 = vsyncpa [#allocation5], 1 }
 0x251   :  { %655 = vsyncpa [#allocation5 + $0x1], 1 }
 0x252   :  { %656 = vsyncpa [#allocation8], 1 }
 0x253   :  { %658 = vsyncpa [#allocation8 + $0x1], 1 }
 0x254   :  { %659 = vsyncpa [#allocation11], 1 }
 0x255   :  { %661 = vsyncpa [#allocation11 + $0x1], 1 }
 0x256   :  { %662 = vsyncpa [#allocation6], 1 }
 0x257   :  { %664 = vsyncpa [#allocation6 + $0x1], 1 }
 0x258   :  { %665 = vsyncpa [#allocation14], 1 }
 0x259   :  { %667 = vsyncpa [#allocation14 + $0x1], 1 }

</bundles_post_ra>
